<compile_context>
chip_gen: v7x
topology: tpu7x:2x2x1
jax: 0.10.0
libtpu: 0.0.40
codegen_flags: <defaults>
</compile_context>

<pallas_src>
import jax
import jax.numpy as jnp
from jax.experimental import pallas as pl
from jax.experimental.pallas import tpu as pltpu

ENC_LOGIT_INIT_SCALE = 0.1


def _round_up(n, m):
    return ((n + m - 1) // m) * m


def _tile_bytes(rows, cols, itemsize):
    """Bytes of one VMEM buffer after (8, 128) tile padding."""
    return _round_up(max(rows, 1), 8) * _round_up(max(cols, 1), 128) * itemsize


def prepare_params(w_enc, b_enc, w_var, b_var):
    """One-time prep (outside the hot path).

    w_*: [D_out, D_in] (PyTorch Linear convention), b_*: [D_out].
    Returns MXU-friendly [D_in, D_out] weights and [1, D_out] biases, all f32 so
    the log-variance path is never quantized before exp().
    """
    w_mu = jnp.asarray(w_enc, jnp.float32).T           # [D_in, D_out]
    w_lv = jnp.asarray(w_var, jnp.float32).T           # [D_in, D_out]
    b_mu = jnp.asarray(b_enc, jnp.float32).reshape(1, -1)
    b_lv = jnp.asarray(b_var, jnp.float32).reshape(1, -1)
    return w_mu, b_mu, w_lv, b_lv


def _gaussian_encoder_kernel(x_ref, wmu_ref, bmu_ref, wlv_ref, blv_ref,
                             mu_ref, var_ref):
    # Two narrow MXU contractions (f32 accumulate), bias add on VPU, exp on the
    # EUP only for the var half, then two direct stores (no padded slab).
    x = x_ref[...]
    mu = jnp.dot(x, wmu_ref[...], preferred_element_type=jnp.float32)
    mu = mu + bmu_ref[...]
    logvar = jnp.dot(x, wlv_ref[...], preferred_element_type=jnp.float32)
    logvar = logvar + blv_ref[...]
    mu_ref[...] = mu.astype(mu_ref.dtype)
    var_ref[...] = jnp.exp(logvar).astype(var_ref.dtype)


def gaussian_encoder(x, w_mu, b_mu, w_lv, b_lv, *, block_b=None):
    """x: [B, D_in]; params from prepare_params(); returns (mu, var) f32 [B, D_out]."""
    B, d_in = x.shape
    d_out = w_mu.shape[1]

    if block_b is None:
        # Aim for at least 2 grid steps (v7x megacore + pipeline overlap),
        # tiles a multiple of 8 sublanes, capped at 1024 rows.
        block_b = min(1024, max(8, _round_up(pl.cdiv(B, 2), 8)))
    block_b = max(8, min(block_b, _round_up(B, 8)))

    x_isz = jnp.dtype(x.dtype).itemsize

    def vmem_need(bb):
        return (2 * _tile_bytes(bb, d_in, x_isz)        # x tile (double-buffered)
                + 2 * 2 * _tile_bytes(bb, d_out, 4)     # mu + var tiles (double-buffered)
                + 2 * 2 * _tile_bytes(d_in, d_out, 4)   # resident weights
                + 2 * 2 * _tile_bytes(1, d_out, 4))     # resident biases

    # Shrink block_b only if the buffers would not fit a conservative budget,
    # then set an explicit scoped-VMEM limit safe on every TPU generation.
    while block_b > 8 and vmem_need(block_b) > (40 << 20):
        block_b = max(8, _round_up(block_b // 2, 8))
    vmem_limit = int(min(max(vmem_need(block_b) + (2 << 20), 16 << 20), 48 << 20))

    grid = (pl.cdiv(B, block_b),)

    cost = pl.CostEstimate(
        flops=2 * 2 * B * d_in * d_out,                 # two GEMMs
        transcendentals=B * d_out,                      # exp on the var logits
        bytes_accessed=(B * d_in * x_isz                # x read
                        + 2 * d_in * d_out * 4          # weights (fetched once)
                        + 2 * d_out * 4                 # biases
                        + 2 * B * d_out * 4),           # mu + var written
    )

    mu, var = pl.pallas_call(
        _gaussian_encoder_kernel,
        out_shape=(jax.ShapeDtypeStruct((B, d_out), jnp.float32),
                   jax.ShapeDtypeStruct((B, d_out), jnp.float32)),
        grid_spec=pltpu.PrefetchScalarGridSpec(
            num_scalar_prefetch=0,
            grid=grid,
            in_specs=[
                pl.BlockSpec((block_b, d_in), lambda i: (i, 0)),   # x: tiled over batch
                pl.BlockSpec((d_in, d_out), lambda i: (0, 0)),     # W_mu: VMEM-resident
                pl.BlockSpec((1, d_out), lambda i: (0, 0)),        # b_mu: VMEM-resident
                pl.BlockSpec((d_in, d_out), lambda i: (0, 0)),     # W_logvar: VMEM-resident
                pl.BlockSpec((1, d_out), lambda i: (0, 0)),        # b_logvar: VMEM-resident
            ],
            out_specs=(
                pl.BlockSpec((block_b, d_out), lambda i: (i, 0)),  # mu
                pl.BlockSpec((block_b, d_out), lambda i: (i, 0)),  # var
            ),
        ),
        compiler_params=pltpu.CompilerParams(
            dimension_semantics=("parallel",),
            vmem_limit_bytes=vmem_limit,
        ),
        cost_estimate=cost,
    )(x, w_mu, b_mu, w_lv, b_lv)
    return mu, var


def init_params(key, input_dim, output_dim):
    """Deterministic init mirroring the PyTorch __init__:
       enc.weight ~ U(-0.1, 0.1), enc.bias = 0,
       var_enc uses default nn.Linear init: U(-1/sqrt(in), 1/sqrt(in))."""
    k1, k2, k3 = jax.random.split(key, 3)
    w_enc = jax.random.uniform(k1, (output_dim, input_dim), jnp.float32,
                               -ENC_LOGIT_INIT_SCALE, ENC_LOGIT_INIT_SCALE)
    b_enc = jnp.zeros((output_dim,), jnp.float32)
    bound = 1.0 / (input_dim ** 0.5)
    w_var = jax.random.uniform(k2, (output_dim, input_dim), jnp.float32, -bound, bound)
    b_var = jax.random.uniform(k3, (output_dim,), jnp.float32, -bound, bound)
    return w_enc, b_enc, w_var, b_var


if __name__ == "__main__":
    key = jax.random.PRNGKey(0)
    B, D_in, D_out = 8, 32, 32

    kx, kp = jax.random.split(key)
    x = jax.random.normal(kx, (B, D_in), jnp.float32)
    w_enc, b_enc, w_var, b_var = init_params(kp, D_in, D_out)

    # One-time param prep (outside the per-call hot path).
    w_mu, b_mu, w_lv, b_lv = prepare_params(w_enc, b_enc, w_var, b_var)

    mu, var = gaussian_encoder(x, w_mu, b_mu, w_lv, b_lv)
    jax.block_until_ready((mu, var))

    # Pure-JAX reference (exactly the PyTorch forward, f32).
    mu_ref = x @ w_enc.T + b_enc
    var_ref = jnp.exp(x @ w_var.T + b_var)

    assert mu.shape == (B, D_out) and var.shape == (B, D_out)
    assert jnp.allclose(mu, mu_ref, atol=2e-3, rtol=2e-3)
    assert jnp.allclose(var, var_ref, atol=2e-3, rtol=2e-3)
    assert bool(jnp.all(var > 0))

    print("KERNEL_OK")
</pallas_src>

<mosaic_0001>
module attributes {stable_mosaic.version = 11 : i64} {
  func.func @_gaussian_encoder_kernel(%arg0: i32, %arg1: memref<8x32xf32, #tpu.memory_space<vmem>>, %arg2: memref<32x32xf32, #tpu.memory_space<vmem>>, %arg3: memref<1x32xf32, #tpu.memory_space<vmem>>, %arg4: memref<32x32xf32, #tpu.memory_space<vmem>>, %arg5: memref<1x32xf32, #tpu.memory_space<vmem>>, %arg6: memref<8x32xf32, #tpu.memory_space<vmem>>, %arg7: memref<8x32xf32, #tpu.memory_space<vmem>>) attributes {dimension_semantics = [#tpu.dimension_semantics<parallel>], iteration_bounds = array<i64: 1>, scalar_prefetch = 0 : i64, scratch_operands = 0 : i64, tpu.core_type = #tpu.core_type<tc>, window_params = [{transform_indices = @transform_0, window_bounds = array<i64: 8, 32>}, {pipeline_mode = #tpu.pipeline_mode<synchronous>, transform_indices = @transform_1, window_bounds = array<i64: 32, 32>}, {pipeline_mode = #tpu.pipeline_mode<synchronous>, transform_indices = @transform_2, window_bounds = array<i64: 1, 32>}, {pipeline_mode = #tpu.pipeline_mode<synchronous>, transform_indices = @transform_3, window_bounds = array<i64: 32, 32>}, {pipeline_mode = #tpu.pipeline_mode<synchronous>, transform_indices = @transform_4, window_bounds = array<i64: 1, 32>}, {transform_indices = @transform_5, window_bounds = array<i64: 8, 32>}, {transform_indices = @transform_6, window_bounds = array<i64: 8, 32>}]} {
    %c0 = arith.constant 0 : index
    %c0_0 = arith.constant 0 : index
    %0 = vector.load %arg1[%c0, %c0_0] : memref<8x32xf32, #tpu.memory_space<vmem>>, vector<8x32xf32>
    %c0_1 = arith.constant 0 : index
    %c0_2 = arith.constant 0 : index
    %1 = vector.load %arg2[%c0_1, %c0_2] : memref<32x32xf32, #tpu.memory_space<vmem>>, vector<32x32xf32>
    %cst = arith.constant dense<0.000000e+00> : vector<8x32xf32>
    %2 = tpu.matmul %0, %1, %cst {dimension_numbers = #tpu.dot_dimension_numbers<[1], [0], [0], [1], [0, 0, 1, 1], [], []>} : vector<8x32xf32>, vector<32x32xf32>, vector<8x32xf32> -> vector<8x32xf32>
    %c0_3 = arith.constant 0 : index
    %c0_4 = arith.constant 0 : index
    %3 = vector.load %arg3[%c0_3, %c0_4] : memref<1x32xf32, #tpu.memory_space<vmem>>, vector<1x32xf32>
    %4 = vector.broadcast %3 : vector<1x32xf32> to vector<8x32xf32>
    %5 = arith.addf %2, %4 : vector<8x32xf32>
    %c0_5 = arith.constant 0 : index
    %c0_6 = arith.constant 0 : index
    %6 = vector.load %arg4[%c0_5, %c0_6] : memref<32x32xf32, #tpu.memory_space<vmem>>, vector<32x32xf32>
    %cst_7 = arith.constant dense<0.000000e+00> : vector<8x32xf32>
    %7 = tpu.matmul %0, %6, %cst_7 {dimension_numbers = #tpu.dot_dimension_numbers<[1], [0], [0], [1], [0, 0, 1, 1], [], []>} : vector<8x32xf32>, vector<32x32xf32>, vector<8x32xf32> -> vector<8x32xf32>
    %c0_8 = arith.constant 0 : index
    %c0_9 = arith.constant 0 : index
    %8 = vector.load %arg5[%c0_8, %c0_9] : memref<1x32xf32, #tpu.memory_space<vmem>>, vector<1x32xf32>
    %9 = vector.broadcast %8 : vector<1x32xf32> to vector<8x32xf32>
    %10 = arith.addf %7, %9 : vector<8x32xf32>
    %c0_10 = arith.constant 0 : index
    %c0_11 = arith.constant 0 : index
    %11 = vector.load %arg6[%c0_10, %c0_11] : memref<8x32xf32, #tpu.memory_space<vmem>>, vector<8x32xf32>
    tpu.vector_store %arg6[%c0_10, %c0_11], %5 {strides = array<i32>} : memref<8x32xf32, #tpu.memory_space<vmem>>, vector<8x32xf32>,
    %12 = math.exp %10 : vector<8x32xf32>
    %c0_12 = arith.constant 0 : index
    %c0_13 = arith.constant 0 : index
    %13 = vector.load %arg7[%c0_12, %c0_13] : memref<8x32xf32, #tpu.memory_space<vmem>>, vector<8x32xf32>
    tpu.vector_store %arg7[%c0_12, %c0_13], %12 {strides = array<i32>} : memref<8x32xf32, #tpu.memory_space<vmem>>, vector<8x32xf32>,
    return
  }
  func.func @transform_0(%arg0: i32) -> (i32, i32) {
    %c0_i32 = arith.constant 0 : i32
    %c0_i32_0 = arith.constant 0 : i32
    return %arg0, %c0_i32 : i32, i32
  }
  func.func @transform_1(%arg0: i32) -> (i32, i32) {
    %c0_i32 = arith.constant 0 : i32
    %c0_i32_0 = arith.constant 0 : i32
    %c0_i32_1 = arith.constant 0 : i32
    return %c0_i32, %c0_i32_0 : i32, i32
  }
  func.func @transform_2(%arg0: i32) -> (i32, i32) {
    %c0_i32 = arith.constant 0 : i32
    %c0_i32_0 = arith.constant 0 : i32
    %c0_i32_1 = arith.constant 0 : i32
    return %c0_i32, %c0_i32_0 : i32, i32
  }
  func.func @transform_3(%arg0: i32) -> (i32, i32) {
    %c0_i32 = arith.constant 0 : i32
    %c0_i32_0 = arith.constant 0 : i32
    %c0_i32_1 = arith.constant 0 : i32
    return %c0_i32, %c0_i32_0 : i32, i32
  }
  func.func @transform_4(%arg0: i32) -> (i32, i32) {
    %c0_i32 = arith.constant 0 : i32
    %c0_i32_0 = arith.constant 0 : i32
    %c0_i32_1 = arith.constant 0 : i32
    return %c0_i32, %c0_i32_0 : i32, i32
  }
  func.func @transform_5(%arg0: i32) -> (i32, i32) {
    %c0_i32 = arith.constant 0 : i32
    %c0_i32_0 = arith.constant 0 : i32
    return %arg0, %c0_i32 : i32, i32
  }
  func.func @transform_6(%arg0: i32) -> (i32, i32) {
    %c0_i32 = arith.constant 0 : i32
    %c0_i32_0 = arith.constant 0 : i32
    return %arg0, %c0_i32 : i32, i32
  }
}

</mosaic_0001>

<bundles_post_ra>
// kernel: tpu_custom_call.1
= control target key start
LH: loop header
LB: loop body
LE: loop exit
PB: predicated region body
PF: predicated region fallthrough
CT: control target
= control target key end

     0   :  { %12 = vsyncpa [#allocation3], 0  ;;  %s563_s0 = inlined_call_operand.hbm [shape: f32[8,32], index: 0, kind: input, shape index: {}]   ;;  %s564_s1 = inlined_call_operand.hbm [shape: f32[32,32], index: 1, kind: input, shape index: {}]   ;;  %s565_s2 = inlined_call_operand.vmem [shape: f32[1,32], index: 2, kind: input, shape index: {}]   ;;  %s566_s3 = inlined_call_operand.hbm [shape: f32[32,32], index: 3, kind: input, shape index: {}]   ;;  %s567_s4 = inlined_call_operand.vmem [shape: f32[1,32], index: 4, kind: input, shape index: {}]   ;;  %s568_s5 = inlined_call_operand.hbm [shape: f32[8,32], index: 5, kind: output, shape index: {0}]   ;;  %s569_s6 = inlined_call_operand.hbm [shape: f32[8,32], index: 6, kind: output, shape index: {1}]  }
   0x1   :  { %13 = vsyncpa [#allocation6], 0 }
   0x2   :  { %14 = vsyncpa [#allocation4], 0 }
   0x3   :  { %15 = vsyncpa [#allocation10], 0  ;;  %s442_s21 = smov [#allocation5]   ;;  %s324_s25 = scalar_lea.hbm %s564_s1, 512 }
   0x4   :  { %s31_s22 = sshll.u32 %s442_s21, 4  ;;  %p325_p0 = scmp.ne.s32.totalorder %s564_s1, %s324_s25  ;;  %s32_s22 = int_to_ptr.vmem [resolvable:$true] %s31_s22 }
   0x5   :  { %p328_p1 = scmp.lt.u32.totalorder %s324_s25, %s564_s1 }
   0x7   :  { %p330_p2 = pnand %p328_p1, %p325_p0 }
   0x9   :  { %333 = shalt.err (!%p330_p2)
}
   0xa   :  { %s334_s30 = scalar_lea.vmem %s32_s22, 512  ;;  %p339_p4 = scmp.lt.s32.totalorder %s32_s22, %s32_s22 }
   0xb   :  { %p335_p3 = scmp.ne.s32.totalorder %s32_s22, %s334_s30  ;;  %p340_p5 = scmp.lt.s32.totalorder %s334_s30, %s334_s30 }
   0xd   :  { %p341_p6 = por %p340_p5, %p339_p4 }
   0xf   :  { %p342_p7 = pnand %p341_p6, %p335_p3 }
  0x11   :  { %345 = shalt.err (!%p342_p7)
}
  0x12   :  { %s443_s7 = smov 128   ;;  %s444_s8 = smov 8  }
  0x13   :  { %37 = dma.hbm_to_vmem [thread:$0]  %s564_s1, 512, %s32_s22, [#allocation6], %s443_s7, %s443_s7, %s444_s8  }
  0x14   :  { %s445_s11 = smov [#allocation2]   ;;  %s446_s13 = smov [#allocation7]  }
  0x15   :  { %s22_s12 = sshll.u32 %s445_s11, 4  ;;  %s45_s14 = sshll.u32 %s446_s13, 4  ;;  %s23_s12 = int_to_ptr.vmem [resolvable:$true] %s22_s12  ;;  %s46_s14 = int_to_ptr.vmem [resolvable:$true] %s45_s14 }
  0x16   :  { %s346_s17 = scalar_lea.hbm %s563_s0, 128 }
  0x17   :  { %p347_p8 = scmp.ne.s32.totalorder %s563_s0, %s346_s17  ;;  %p350_p9 = scmp.lt.u32.totalorder %s346_s17, %s563_s0 }
  0x19   :  { %p352_p10 = pnand %p350_p9, %p347_p8 }
  0x1b   :  { %355 = shalt.err (!%p352_p10)
}
  0x1c   :  { %s356_s1 = scalar_lea.vmem %s23_s12, 128  ;;  %p361_p12 = scmp.lt.s32.totalorder %s23_s12, %s23_s12 }
  0x1d   :  { %p357_p11 = scmp.ne.s32.totalorder %s23_s12, %s356_s1  ;;  %p362_p13 = scmp.lt.s32.totalorder %s356_s1, %s356_s1 }
  0x1f   :  { %p363_p0 = por %p362_p13, %p361_p12 }
  0x21   :  { %p364_p1 = pnand %p363_p0, %p357_p11 }
  0x23   :  { %367 = shalt.err (!%p364_p1)
}
  0x24   :  { %25 = dma.hbm_to_vmem [thread:$0]  %s563_s0, 128, %s23_s12, [#allocation3]  }
  0x25   :  { %s368_s26 = scalar_lea.hbm %s566_s3, 512 }
  0x26   :  { %p369_p2 = scmp.ne.s32.totalorder %s566_s3, %s368_s26  ;;  %p372_p3 = scmp.lt.u32.totalorder %s368_s26, %s566_s3 }
  0x28   :  { %p374_p4 = pnand %p372_p3, %p369_p2 }
  0x2a   :  { %377 = shalt.err (!%p374_p4)
}
  0x2b   :  { %s378_s9 = scalar_lea.vmem %s46_s14, 512  ;;  %p383_p6 = scmp.lt.s32.totalorder %s46_s14, %s46_s14 }
  0x2c   :  { %p379_p5 = scmp.ne.s32.totalorder %s46_s14, %s378_s9  ;;  %p384_p7 = scmp.lt.s32.totalorder %s378_s9, %s378_s9 }
  0x2e   :  { %p385_p8 = por %p384_p7, %p383_p6 }
  0x30   :  { %p386_p9 = pnand %p385_p8, %p379_p5 }
  0x32   :  { %389 = shalt.err (!%p386_p9)
}
  0x33   :  { %51 = dma.hbm_to_vmem [thread:$0]  %s566_s3, 512, %s46_s14, [#allocation6], %s443_s7, %s443_s7, %s444_s8  }
  0x34   :  { %434 = dma.done.wait [#allocation3], 128  }
  0x35   :  { %435 = vsyncadd [#allocation3], 4294967168 }
  0x36   :  { %436 = dma.done.wait [#allocation6], 1024  }
  0x37   :  { %437 = vsyncadd [#allocation6], 4294966272  ;;  %v447_v0 = vmov 0.0|0.0   ;;  %vm448_vm0 = vmmov 0   ;;  %v449_v1 = vmov 0.0   ;;  %v149_v2 = vld [vmem:[#allocation7] sm:$0xff] }
  0x38   :  { %306 = vmatprep.subr.bf16.mxu1 %v447_v0  ;;  %297 = vmatprep.mubr.msk.f32.mxu1 %vm448_vm0, %v449_v1  ;;  %v150_v3 = vld [vmem:[#allocation7 + $0x8] sm:$0xff]  ;;  %v151_v4 = vld [vmem:[#allocation7 + $0x10] sm:$0xff]  ;;  %v152_v6 = vld [vmem:[#allocation7 + $0x18] sm:$0xff]  ;;  %vm75_vm1 = vcmask 261120   ;;  %s450_s12 = smov [#allocation8]  }
  0x39   :  { %300 = vmatprep.subr.bf16.mxu0 %v447_v0  ;;  %286 = vmatprep.mubr.msk.f32.mxu0 %vm448_vm0, %v449_v1  ;;  %v307_v5 = vpack.c.bf16 %v150_v3, %v149_v2  ;;  %v64_v7 = vld [vmem:[#allocation5] sm:$0xff]  ;;  %v65_v8 = vld [vmem:[#allocation5 + $0x8] sm:$0xff]  ;;  %v66_v9 = vld [vmem:[#allocation5 + $0x10] sm:$0xff]  ;;  %v310_v11 = vpack.c.bf16 %v152_v6, %v151_v4  ;;  %s240_s13 = sshll.u32 %s450_s12, 4  ;;  %s241_s13 = int_to_ptr.vmem [resolvable:$true] %s240_s13 }
  0x3a   :  { %v67_v10 = vld [vmem:[#allocation5 + $0x18] sm:$0xff]  ;;  %v301_v12 = vpack.c.bf16 %v65_v8, %v64_v7  ;;  %s390_s14 = scalar_lea.vmem %s241_s13, 128  ;;  %p395_p11 = scmp.lt.s32.totalorder %s241_s13, %s241_s13 }
  0x3b   :  { %308 = vmatpush3.bf16.msra.mxu1 %v307_v5  ;;  %v304_v13 = vpack.c.bf16 %v67_v10, %v66_v9  ;;  %v63_v14 = vld [vmem:[#allocation2] sm:$0xff]  ;;  %p391_p10 = scmp.ne.s32.totalorder %s241_s13, %s390_s14  ;;  %p396_p12 = scmp.lt.s32.totalorder %s390_s14, %s390_s14 }
  0x3c   :  { %309 = vmatprep.subr.bf16.mxu1 %v447_v0  ;;  %302 = vmatpush3.bf16.msra.mxu0 %v301_v12  ;;  %v266_v15 = vld [vmem:[%s567_s4] ss:$0 sm:$0xff] }
  0x3d   :  { %303 = vmatprep.subr.bf16.mxu0 %v447_v0  ;;  %v264_v17 = vld [vmem:[%s565_s2] ss:$0 sm:$0xff]  ;;  %p397_p13 = por %p396_p12, %p395_p11 }
  0x3f   :  { %311 = vmatpush3.bf16.msra.mxu1 %v310_v11  ;;  %p398_p0 = pnand %p397_p13, %p391_p10 }
  0x40   :  { %305 = vmatpush3.bf16.msra.mxu0 %v304_v13 }
  0x42   :  { %298 = vmatmul.mubr.msk.f32.vlgmr.msra.gmra.mrb[0].mxu1 %vm75_vm1, %v63_v14 }
  0x43   :  { %287 = vmatmul.mubr.msk.f32.vlgmr.msra.gmra.mrb[0].mxu0 %vm75_vm1, %v63_v14 }
 0x115   :  { %v226_v16 = vpop.f32.mrb[0].mxu1 }
 0x116   :  { %v227_v18 = vadd.f32 %v266_v15, %v226_v16  ;;  %v299_v19 = vpop.f32.mrb[1].mxu1  ;;  %v145_v20 = vpop.f32.mrb[0].mxu0 }
 0x117   :  { %v146_v22 = vadd.f32 %v264_v17, %v145_v20  ;;  %v288_v23 = vpop.f32.mrb[1].mxu0 }
 0x118   :  { %v231_v21 = vmul.f32 1.442695, %v227_v18 }
 0x119   :  { %230 = vst.msk [vmem:[#allocation8] sm:$0xff] %vm75_vm1, %v146_v22 }
 0x11a   :  { %322 = vpow2.f32 %v231_v21 }
 0x11b   :  { %401 = shalt.err (!%p398_p0)
}
 0x11c   :  { %s402_s15 = scalar_lea.hbm %s568_s5, 128 }
 0x11d   :  { %p403_p1 = scmp.ne.s32.totalorder %s568_s5, %s402_s15  ;;  %p406_p2 = scmp.lt.u32.totalorder %s402_s15, %s568_s5 }
 0x11f   :  { %p408_p3 = pnand %p406_p2, %p403_p1 }
 0x121   :  { %411 = shalt.err (!%p408_p3)
}
 0x122   :  { %243 = dma.vmem_to_hbm [thread:$0]  %s241_s13, 128, %s568_s5, [#allocation4]  }
 0x123   :  { %s451_s1 = smov [#allocation9]  }
 0x124   :  { %s250_s22 = sshll.u32 %s451_s1, 4  ;;  %v323_v24 = vpop.eup %322  ;;  %s251_s22 = int_to_ptr.vmem [resolvable:$true] %s250_s22 }
 0x125   :  { %233 = vst.msk [vmem:[#allocation9] sm:$0xff] %vm75_vm1, %v323_v24  ;;  %s412_s23 = scalar_lea.vmem %s251_s22, 128  ;;  %p417_p5 = scmp.lt.s32.totalorder %s251_s22, %s251_s22 }
 0x126   :  { %p413_p4 = scmp.ne.s32.totalorder %s251_s22, %s412_s23  ;;  %p418_p6 = scmp.lt.s32.totalorder %s412_s23, %s412_s23 }
 0x128   :  { %p419_p7 = por %p418_p6, %p417_p5 }
 0x12a   :  { %p420_p8 = pnand %p419_p7, %p413_p4 }
 0x12c   :  { %423 = shalt.err (!%p420_p8)
}
 0x12d   :  { %s424_s26 = scalar_lea.hbm %s569_s6, 128 }
 0x12e   :  { %p425_p9 = scmp.ne.s32.totalorder %s569_s6, %s424_s26  ;;  %p428_p10 = scmp.lt.u32.totalorder %s424_s26, %s569_s6 }
 0x130   :  { %p430_p11 = pnand %p428_p10, %p425_p9 }
 0x132   :  { %433 = shalt.err (!%p430_p11)
}
 0x133   :  { %253 = dma.vmem_to_hbm [thread:$0]  %s251_s22, 128, %s569_s6, [#allocation10]  }
 0x134   :  { %438 = dma.done.wait [#allocation4], 128  }
 0x135   :  { %439 = vsyncadd [#allocation4], 4294967168 }
 0x136   :  { %440 = dma.done.wait [#allocation10], 128  }
 0x137   :  { %441 = vsyncadd [#allocation10], 4294967168 }
 0x138   :  { %260 = vsyncpa [#allocation3], 1 }
 0x139   :  { %261 = vsyncpa [#allocation6], 1 }
 0x13a   :  { %262 = vsyncpa [#allocation4], 1 }
 0x13b   :  { %263 = vsyncpa [#allocation10], 1 }

</bundles_post_ra>
